<compile_context>
chip_gen: v6e
topology: v6e:2x2x1
jax: 0.10.0
libtpu: 0.0.40
codegen_flags: <defaults>
</compile_context>

<pallas_src>
import functools

import jax
import jax.numpy as jnp
from jax import lax
from jax.experimental import pallas as pl
from jax.experimental.pallas import tpu as pltpu


def lstm_tagger_kernel(sent_ref,          # VMEM (seq, 1) int32
                       emb_ref,           # VMEM (V, E)
                       w_ih_ref,          # VMEM (E, 4H)   gates [i, f, o, g]
                       w_hh_ref,          # VMEM (H, 4H)   gates [i, f, o, g]
                       b_ref,             # VMEM (1, 4H)   gates [i, f, o, g]
                       w_out_ref,         # VMEM (H, TP)   lane-padded
                       b_out_ref,         # VMEM (1, TP)   lane-padded
                       out_ref,           # VMEM (seq, TP) lane-padded
                       *, num_tags):
    V = emb_ref.shape[0]
    seq = sent_ref.shape[0]
    H = w_hh_ref.shape[0]

    # ---- fused embedding gather + input projection (one MXU chain) ---------
    ids = sent_ref[...]                                       # (seq, 1) int32
    col = lax.broadcasted_iota(jnp.int32, (seq, V), 1)
    onehot = (col == ids).astype(jnp.float32)                 # (seq, V)
    embeds = jnp.dot(onehot, emb_ref[...],
                     preferred_element_type=jnp.float32)      # (seq, E)
    xw = jnp.dot(embeds, w_ih_ref[...],
                 preferred_element_type=jnp.float32) + b_ref[...]   # (seq, 4H)

    # W_hh pinned in vregs, loaded once (H x 4H f32 = 4 vregs).
    # TODO(synk): on v7x, consider pltpu.matmul_push_rhs to latch W_hh in the
    # MXU across the unrolled steps (only if the bundle dump shows a re-push).
    w_hh = w_hh_ref[...]

    h = jnp.zeros((1, H), jnp.float32)
    c = jnp.zeros((1, H), jnp.float32)
    hs = []
    # Static Python loop == fully unrolled recurrence; xw row slices are
    # static, hidden rows never touch VMEM.
    for t in range(seq):
        gates = xw[t:t + 1, :] + jnp.dot(h, w_hh,
                                         preferred_element_type=jnp.float32)
        sig = jax.nn.sigmoid(gates[:, 0:3 * H])   # [i, f, o] in one EUP pass
        g = jnp.tanh(gates[:, 3 * H:4 * H])       # tanh only on the g quarter
        i = sig[:, 0:H]
        f = sig[:, H:2 * H]
        o = sig[:, 2 * H:3 * H]
        c = f * c + i * g
        h = o * jnp.tanh(c)
        hs.append(h)
    lstm_out = jnp.concatenate(hs, axis=0)                    # (seq, H)

    # ---- hidden2tag + masked log_softmax (lane-dense output) ---------------
    tag_space = (jnp.dot(lstm_out, w_out_ref[...],
                         preferred_element_type=jnp.float32)
                 + b_out_ref[...])                            # (seq, TP)
    lane = lax.broadcasted_iota(jnp.int32, tag_space.shape, 1)
    tag_space = jnp.where(lane < num_tags, tag_space, jnp.float32(-1e30))
    m = jnp.max(tag_space, axis=-1, keepdims=True)
    shifted = tag_space - m
    lse = jnp.log(jnp.sum(jnp.exp(shifted), axis=-1, keepdims=True))
    out_ref[...] = shifted - lse


def _reorder_gates(w):
    """PyTorch gate order [i, f, g, o] -> kernel order [i, f, o, g]."""
    Hh = w.shape[-1] // 4
    return jnp.concatenate(
        [w[..., 0:Hh], w[..., Hh:2 * Hh], w[..., 3 * Hh:4 * Hh],
         w[..., 2 * Hh:3 * Hh]], axis=-1)


def lstm_tagger_forward(sentence, params):
    # TODO(synk): batch multiple sentences per call (fills MXU M / vreg
    # sublanes, and on v7x the batch axis could be split across the 2 TCs);
    # the PyTorch module is strictly single-sentence, so semantics are kept 1:1.
    # TODO(synk): for large vocabularies keep the embedding table in HBM
    # (memory_space=pl.ANY) and DMA-gather only the needed rows; at V=20 the
    # whole table trivially fits VMEM on every generation.
    emb = params["embedding"]
    V, E = emb.shape
    H = params["w_hh"].shape[0]
    T = params["w_out"].shape[1]
    seq = sentence.shape[0]

    # Reorder gates so sigmoid covers a contiguous 3H block in-kernel.
    w_ih = _reorder_gates(params["w_ih"])
    w_hh = _reorder_gates(params["w_hh"])
    b = _reorder_gates(params["b"])

    # Lane-pad the tag dimension so the output stores are full-lane vst's.
    TP = pl.cdiv(T, 128) * 128
    w_out_p = jnp.zeros((H, TP), jnp.float32).at[:, :T].set(params["w_out"])
    b_out_p = jnp.zeros((1, TP), jnp.float32).at[:, :T].set(params["b_out"])

    sent2d = sentence.astype(jnp.int32).reshape(seq, 1)

    vmem = pl.BlockSpec(memory_space=pltpu.MemorySpace.VMEM)
    out_padded = pl.pallas_call(
        functools.partial(lstm_tagger_kernel, num_tags=T),
        out_shape=jax.ShapeDtypeStruct((seq, TP), jnp.float32),
        in_specs=[vmem] * 7,
        out_specs=vmem,
    )(sent2d, emb, w_ih, w_hh, b, w_out_p, b_out_p)
    return out_padded[:, :T]


def lstm_tagger_reference(sentence, params):
    """Pure-JAX reference with identical semantics (PyTorch gate order)."""
    embeds = params["embedding"][sentence]
    H = params["w_hh"].shape[0]

    def step(carry, x_t):
        h, c = carry
        gates = x_t[None, :] @ params["w_ih"] + h @ params["w_hh"] + params["b"]
        i = jax.nn.sigmoid(gates[:, 0:H])
        f = jax.nn.sigmoid(gates[:, H:2 * H])
        g = jnp.tanh(gates[:, 2 * H:3 * H])
        o = jax.nn.sigmoid(gates[:, 3 * H:4 * H])
        c = f * c + i * g
        h = o * jnp.tanh(c)
        return (h, c), h[0]

    init = (jnp.zeros((1, H), jnp.float32), jnp.zeros((1, H), jnp.float32))
    _, lstm_out = lax.scan(step, init, embeds)
    tag_space = lstm_out @ params["w_out"] + params["b_out"]
    return jax.nn.log_softmax(tag_space, axis=1)


def init_params(key, embedding_dim, hidden_dim, vocab_size, tagset_size):
    ks = jax.random.split(key, 8)
    E, H, V, T = embedding_dim, hidden_dim, vocab_size, tagset_size
    s_lstm = 1.0 / jnp.sqrt(H)
    s_lin = 1.0 / jnp.sqrt(H)
    # PyTorch stores (4H, in); we store the transpose so gates = x @ W.
    # Gate order here is PyTorch's [i, f, g, o]; the kernel wrapper reorders.
    w_ih = jax.random.uniform(ks[0], (E, 4 * H), jnp.float32, -s_lstm, s_lstm)
    w_hh = jax.random.uniform(ks[1], (H, 4 * H), jnp.float32, -s_lstm, s_lstm)
    b_ih = jax.random.uniform(ks[2], (1, 4 * H), jnp.float32, -s_lstm, s_lstm)
    b_hh = jax.random.uniform(ks[3], (1, 4 * H), jnp.float32, -s_lstm, s_lstm)
    return {
        "embedding": jax.random.normal(ks[4], (V, E), jnp.float32),
        "w_ih": w_ih,
        "w_hh": w_hh,
        "b": b_ih + b_hh,
        "w_out": jax.random.uniform(ks[5], (H, T), jnp.float32, -s_lin, s_lin),
        "b_out": jax.random.uniform(ks[6], (1, T), jnp.float32, -s_lin, s_lin),
    }


if __name__ == "__main__":
    EMBEDDING_DIM = 16
    HIDDEN_DIM = 32
    VOCAB_SIZE = 20
    TAGSET_SIZE = 8
    SEQ_LEN = 8

    key = jax.random.PRNGKey(0)
    k_params, k_sent = jax.random.split(key)
    params = init_params(k_params, EMBEDDING_DIM, HIDDEN_DIM, VOCAB_SIZE, TAGSET_SIZE)
    sentence = jax.random.randint(k_sent, (SEQ_LEN,), 0, VOCAB_SIZE, dtype=jnp.int32)

    tag_scores = jax.block_until_ready(lstm_tagger_forward(sentence, params))
    ref = jax.block_until_ready(lstm_tagger_reference(sentence, params))

    assert tag_scores.shape == (SEQ_LEN, TAGSET_SIZE)
    assert jnp.allclose(tag_scores, ref, atol=1e-5, rtol=1e-5)
    print("KERNEL_OK")
</pallas_src>

<mosaic_0001>
module attributes {stable_mosaic.version = 11 : i64} {
  func.func @lstm_tagger_kernel(%arg0: memref<8x1xi32, #tpu.memory_space<vmem>>, %arg1: memref<20x16xf32, #tpu.memory_space<vmem>>, %arg2: memref<16x128xf32, #tpu.memory_space<vmem>>, %arg3: memref<32x128xf32, #tpu.memory_space<vmem>>, %arg4: memref<1x128xf32, #tpu.memory_space<vmem>>, %arg5: memref<32x128xf32, #tpu.memory_space<vmem>>, %arg6: memref<1x128xf32, #tpu.memory_space<vmem>>, %arg7: memref<8x128xf32, #tpu.memory_space<vmem>>) attributes {dimension_semantics = [], scalar_prefetch = 0 : i64, scratch_operands = 0 : i64, tpu.core_type = #tpu.core_type<tc>} {
    %c0 = arith.constant 0 : index
    %c0_0 = arith.constant 0 : index
    %0 = vector.load %arg0[%c0, %c0_0] : memref<8x1xi32, #tpu.memory_space<vmem>>, vector<8x1xi32>
    %1 = tpu.iota {dimensions = array<i32: 1>} : vector<8x20xi32>
    %2 = vector.broadcast %0 : vector<8x1xi32> to vector<8x20xi32>
    %3 = arith.cmpi eq, %1, %2 : vector<8x20xi32>
    %4 = arith.extui %3 : vector<8x20xi1> to vector<8x20xi32>
    %5 = arith.sitofp %4 : vector<8x20xi32> to vector<8x20xf32>
    %c0_1 = arith.constant 0 : index
    %c0_2 = arith.constant 0 : index
    %6 = vector.load %arg1[%c0_1, %c0_2] : memref<20x16xf32, #tpu.memory_space<vmem>>, vector<20x16xf32>
    %cst = arith.constant dense<0.000000e+00> : vector<8x16xf32>
    %7 = tpu.matmul %5, %6, %cst {dimension_numbers = #tpu.dot_dimension_numbers<[1], [0], [0], [1], [0, 0, 1, 1], [], []>} : vector<8x20xf32>, vector<20x16xf32>, vector<8x16xf32> -> vector<8x16xf32>
    %c0_3 = arith.constant 0 : index
    %c0_4 = arith.constant 0 : index
    %8 = vector.load %arg2[%c0_3, %c0_4] : memref<16x128xf32, #tpu.memory_space<vmem>>, vector<16x128xf32>
    %cst_5 = arith.constant dense<0.000000e+00> : vector<8x128xf32>
    %9 = tpu.matmul %7, %8, %cst_5 {dimension_numbers = #tpu.dot_dimension_numbers<[1], [0], [0], [1], [0, 0, 1, 1], [], []>} : vector<8x16xf32>, vector<16x128xf32>, vector<8x128xf32> -> vector<8x128xf32>
    %c0_6 = arith.constant 0 : index
    %c0_7 = arith.constant 0 : index
    %10 = vector.load %arg4[%c0_6, %c0_7] : memref<1x128xf32, #tpu.memory_space<vmem>>, vector<1x128xf32>
    %11 = vector.broadcast %10 : vector<1x128xf32> to vector<8x128xf32>
    %12 = arith.addf %9, %11 : vector<8x128xf32>
    %c0_8 = arith.constant 0 : index
    %c0_9 = arith.constant 0 : index
    %13 = vector.load %arg3[%c0_8, %c0_9] : memref<32x128xf32, #tpu.memory_space<vmem>>, vector<32x128xf32>
    %cst_10 = arith.constant 0.000000e+00 : f32
    %14 = vector.broadcast %cst_10 : f32 to vector<1x32xf32>
    %cst_11 = arith.constant 0.000000e+00 : f32
    %15 = vector.broadcast %cst_11 : f32 to vector<1x32xf32>
    %16 = vector.extract_strided_slice %12 {offsets = [0, 0], sizes = [1, 128], strides = [1, 1]} : vector<8x128xf32> to vector<1x128xf32>
    %cst_12 = arith.constant dense<0.000000e+00> : vector<1x128xf32>
    %17 = tpu.matmul %14, %13, %cst_12 {dimension_numbers = #tpu.dot_dimension_numbers<[1], [0], [0], [1], [0, 0, 1, 1], [], []>} : vector<1x32xf32>, vector<32x128xf32>, vector<1x128xf32> -> vector<1x128xf32>
    %18 = arith.addf %16, %17 : vector<1x128xf32>
    %19 = vector.extract_strided_slice %18 {offsets = [0, 0], sizes = [1, 96], strides = [1, 1]} : vector<1x128xf32> to vector<1x96xf32>
    %20 = arith.negf %19 : vector<1x96xf32>
    %21 = math.exp %20 : vector<1x96xf32>
    %cst_13 = arith.constant 1.000000e+00 : f32
    %22 = vector.broadcast %cst_13 : f32 to vector<1x96xf32>
    %23 = arith.addf %22, %21 : vector<1x96xf32>
    %24 = arith.divf %22, %23 : vector<1x96xf32>
    %25 = vector.extract_strided_slice %18 {offsets = [0, 96], sizes = [1, 32], strides = [1, 1]} : vector<1x128xf32> to vector<1x32xf32>
    %26 = math.tanh %25 : vector<1x32xf32>
    %27 = vector.extract_strided_slice %24 {offsets = [0, 0], sizes = [1, 32], strides = [1, 1]} : vector<1x96xf32> to vector<1x32xf32>
    %28 = vector.extract_strided_slice %24 {offsets = [0, 32], sizes = [1, 32], strides = [1, 1]} : vector<1x96xf32> to vector<1x32xf32>
    %29 = vector.extract_strided_slice %24 {offsets = [0, 64], sizes = [1, 32], strides = [1, 1]} : vector<1x96xf32> to vector<1x32xf32>
    %30 = arith.mulf %28, %15 : vector<1x32xf32>
    %31 = arith.mulf %27, %26 : vector<1x32xf32>
    %32 = arith.addf %30, %31 : vector<1x32xf32>
    %33 = math.tanh %32 : vector<1x32xf32>
    %34 = arith.mulf %29, %33 : vector<1x32xf32>
    %35 = vector.extract_strided_slice %12 {offsets = [1, 0], sizes = [1, 128], strides = [1, 1]} : vector<8x128xf32> to vector<1x128xf32>
    %cst_14 = arith.constant dense<0.000000e+00> : vector<1x128xf32>
    %36 = tpu.matmul %34, %13, %cst_14 {dimension_numbers = #tpu.dot_dimension_numbers<[1], [0], [0], [1], [0, 0, 1, 1], [], []>} : vector<1x32xf32>, vector<32x128xf32>, vector<1x128xf32> -> vector<1x128xf32>
    %37 = arith.addf %35, %36 : vector<1x128xf32>
    %38 = vector.extract_strided_slice %37 {offsets = [0, 0], sizes = [1, 96], strides = [1, 1]} : vector<1x128xf32> to vector<1x96xf32>
    %39 = arith.negf %38 : vector<1x96xf32>
    %40 = math.exp %39 : vector<1x96xf32>
    %cst_15 = arith.constant 1.000000e+00 : f32
    %41 = vector.broadcast %cst_15 : f32 to vector<1x96xf32>
    %42 = arith.addf %41, %40 : vector<1x96xf32>
    %43 = arith.divf %41, %42 : vector<1x96xf32>
    %44 = vector.extract_strided_slice %37 {offsets = [0, 96], sizes = [1, 32], strides = [1, 1]} : vector<1x128xf32> to vector<1x32xf32>
    %45 = math.tanh %44 : vector<1x32xf32>
    %46 = vector.extract_strided_slice %43 {offsets = [0, 0], sizes = [1, 32], strides = [1, 1]} : vector<1x96xf32> to vector<1x32xf32>
    %47 = vector.extract_strided_slice %43 {offsets = [0, 32], sizes = [1, 32], strides = [1, 1]} : vector<1x96xf32> to vector<1x32xf32>
    %48 = vector.extract_strided_slice %43 {offsets = [0, 64], sizes = [1, 32], strides = [1, 1]} : vector<1x96xf32> to vector<1x32xf32>
    %49 = arith.mulf %47, %32 : vector<1x32xf32>
    %50 = arith.mulf %46, %45 : vector<1x32xf32>
    %51 = arith.addf %49, %50 : vector<1x32xf32>
    %52 = math.tanh %51 : vector<1x32xf32>
    %53 = arith.mulf %48, %52 : vector<1x32xf32>
    %54 = vector.extract_strided_slice %12 {offsets = [2, 0], sizes = [1, 128], strides = [1, 1]} : vector<8x128xf32> to vector<1x128xf32>
    %cst_16 = arith.constant dense<0.000000e+00> : vector<1x128xf32>
    %55 = tpu.matmul %53, %13, %cst_16 {dimension_numbers = #tpu.dot_dimension_numbers<[1], [0], [0], [1], [0, 0, 1, 1], [], []>} : vector<1x32xf32>, vector<32x128xf32>, vector<1x128xf32> -> vector<1x128xf32>
    %56 = arith.addf %54, %55 : vector<1x128xf32>
    %57 = vector.extract_strided_slice %56 {offsets = [0, 0], sizes = [1, 96], strides = [1, 1]} : vector<1x128xf32> to vector<1x96xf32>
    %58 = arith.negf %57 : vector<1x96xf32>
    %59 = math.exp %58 : vector<1x96xf32>
    %cst_17 = arith.constant 1.000000e+00 : f32
    %60 = vector.broadcast %cst_17 : f32 to vector<1x96xf32>
    %61 = arith.addf %60, %59 : vector<1x96xf32>
    %62 = arith.divf %60, %61 : vector<1x96xf32>
    %63 = vector.extract_strided_slice %56 {offsets = [0, 96], sizes = [1, 32], strides = [1, 1]} : vector<1x128xf32> to vector<1x32xf32>
    %64 = math.tanh %63 : vector<1x32xf32>
    %65 = vector.extract_strided_slice %62 {offsets = [0, 0], sizes = [1, 32], strides = [1, 1]} : vector<1x96xf32> to vector<1x32xf32>
    %66 = vector.extract_strided_slice %62 {offsets = [0, 32], sizes = [1, 32], strides = [1, 1]} : vector<1x96xf32> to vector<1x32xf32>
    %67 = vector.extract_strided_slice %62 {offsets = [0, 64], sizes = [1, 32], strides = [1, 1]} : vector<1x96xf32> to vector<1x32xf32>
    %68 = arith.mulf %66, %51 : vector<1x32xf32>
    %69 = arith.mulf %65, %64 : vector<1x32xf32>
    %70 = arith.addf %68, %69 : vector<1x32xf32>
    %71 = math.tanh %70 : vector<1x32xf32>
    %72 = arith.mulf %67, %71 : vector<1x32xf32>
    %73 = vector.extract_strided_slice %12 {offsets = [3, 0], sizes = [1, 128], strides = [1, 1]} : vector<8x128xf32> to vector<1x128xf32>
    %cst_18 = arith.constant dense<0.000000e+00> : vector<1x128xf32>
    %74 = tpu.matmul %72, %13, %cst_18 {dimension_numbers = #tpu.dot_dimension_numbers<[1], [0], [0], [1], [0, 0, 1, 1], [], []>} : vector<1x32xf32>, vector<32x128xf32>, vector<1x128xf32> -> vector<1x128xf32>
    %75 = arith.addf %73, %74 : vector<1x128xf32>
    %76 = vector.extract_strided_slice %75 {offsets = [0, 0], sizes = [1, 96], strides = [1, 1]} : vector<1x128xf32> to vector<1x96xf32>
    %77 = arith.negf %76 : vector<1x96xf32>
    %78 = math.exp %77 : vector<1x96xf32>
    %cst_19 = arith.constant 1.000000e+00 : f32
    %79 = vector.broadcast %cst_19 : f32 to vector<1x96xf32>
    %80 = arith.addf %79, %78 : vector<1x96xf32>
    %81 = arith.divf %79, %80 : vector<1x96xf32>
    %82 = vector.extract_strided_slice %75 {offsets = [0, 96], sizes = [1, 32], strides = [1, 1]} : vector<1x128xf32> to vector<1x32xf32>
    %83 = math.tanh %82 : vector<1x32xf32>
    %84 = vector.extract_strided_slice %81 {offsets = [0, 0], sizes = [1, 32], strides = [1, 1]} : vector<1x96xf32> to vector<1x32xf32>
    %85 = vector.extract_strided_slice %81 {offsets = [0, 32], sizes = [1, 32], strides = [1, 1]} : vector<1x96xf32> to vector<1x32xf32>
    %86 = vector.extract_strided_slice %81 {offsets = [0, 64], sizes = [1, 32], strides = [1, 1]} : vector<1x96xf32> to vector<1x32xf32>
    %87 = arith.mulf %85, %70 : vector<1x32xf32>
    %88 = arith.mulf %84, %83 : vector<1x32xf32>
    %89 = arith.addf %87, %88 : vector<1x32xf32>
    %90 = math.tanh %89 : vector<1x32xf32>
    %91 = arith.mulf %86, %90 : vector<1x32xf32>
    %92 = vector.extract_strided_slice %12 {offsets = [4, 0], sizes = [1, 128], strides = [1, 1]} : vector<8x128xf32> to vector<1x128xf32>
    %cst_20 = arith.constant dense<0.000000e+00> : vector<1x128xf32>
    %93 = tpu.matmul %91, %13, %cst_20 {dimension_numbers = #tpu.dot_dimension_numbers<[1], [0], [0], [1], [0, 0, 1, 1], [], []>} : vector<1x32xf32>, vector<32x128xf32>, vector<1x128xf32> -> vector<1x128xf32>
    %94 = arith.addf %92, %93 : vector<1x128xf32>
    %95 = vector.extract_strided_slice %94 {offsets = [0, 0], sizes = [1, 96], strides = [1, 1]} : vector<1x128xf32> to vector<1x96xf32>
    %96 = arith.negf %95 : vector<1x96xf32>
    %97 = math.exp %96 : vector<1x96xf32>
    %cst_21 = arith.constant 1.000000e+00 : f32
    %98 = vector.broadcast %cst_21 : f32 to vector<1x96xf32>
    %99 = arith.addf %98, %97 : vector<1x96xf32>
    %100 = arith.divf %98, %99 : vector<1x96xf32>
    %101 = vector.extract_strided_slice %94 {offsets = [0, 96], sizes = [1, 32], strides = [1, 1]} : vector<1x128xf32> to vector<1x32xf32>
    %102 = math.tanh %101 : vector<1x32xf32>
    %103 = vector.extract_strided_slice %100 {offsets = [0, 0], sizes = [1, 32], strides = [1, 1]} : vector<1x96xf32> to vector<1x32xf32>
    %104 = vector.extract_strided_slice %100 {offsets = [0, 32], sizes = [1, 32], strides = [1, 1]} : vector<1x96xf32> to vector<1x32xf32>
    %105 = vector.extract_strided_slice %100 {offsets = [0, 64], sizes = [1, 32], strides = [1, 1]} : vector<1x96xf32> to vector<1x32xf32>
    %106 = arith.mulf %104, %89 : vector<1x32xf32>
    %107 = arith.mulf %103, %102 : vector<1x32xf32>
    %108 = arith.addf %106, %107 : vector<1x32xf32>
    %109 = math.tanh %108 : vector<1x32xf32>
    %110 = arith.mulf %105, %109 : vector<1x32xf32>
    %111 = vector.extract_strided_slice %12 {offsets = [5, 0], sizes = [1, 128], strides = [1, 1]} : vector<8x128xf32> to vector<1x128xf32>
    %cst_22 = arith.constant dense<0.000000e+00> : vector<1x128xf32>
    %112 = tpu.matmul %110, %13, %cst_22 {dimension_numbers = #tpu.dot_dimension_numbers<[1], [0], [0], [1], [0, 0, 1, 1], [], []>} : vector<1x32xf32>, vector<32x128xf32>, vector<1x128xf32> -> vector<1x128xf32>
    %113 = arith.addf %111, %112 : vector<1x128xf32>
    %114 = vector.extract_strided_slice %113 {offsets = [0, 0], sizes = [1, 96], strides = [1, 1]} : vector<1x128xf32> to vector<1x96xf32>
    %115 = arith.negf %114 : vector<1x96xf32>
    %116 = math.exp %115 : vector<1x96xf32>
    %cst_23 = arith.constant 1.000000e+00 : f32
    %117 = vector.broadcast %cst_23 : f32 to vector<1x96xf32>
    %118 = arith.addf %117, %116 : vector<1x96xf32>
    %119 = arith.divf %117, %118 : vector<1x96xf32>
    %120 = vector.extract_strided_slice %113 {offsets = [0, 96], sizes = [1, 32], strides = [1, 1]} : vector<1x128xf32> to vector<1x32xf32>
    %121 = math.tanh %120 : vector<1x32xf32>
    %122 = vector.extract_strided_slice %119 {offsets = [0, 0], sizes = [1, 32], strides = [1, 1]} : vector<1x96xf32> to vector<1x32xf32>
    %123 = vector.extract_strided_slice %119 {offsets = [0, 32], sizes = [1, 32], strides = [1, 1]} : vector<1x96xf32> to vector<1x32xf32>
    %124 = vector.extract_strided_slice %119 {offsets = [0, 64], sizes = [1, 32], strides = [1, 1]} : vector<1x96xf32> to vector<1x32xf32>
    %125 = arith.mulf %123, %108 : vector<1x32xf32>
    %126 = arith.mulf %122, %121 : vector<1x32xf32>
    %127 = arith.addf %125, %126 : vector<1x32xf32>
    %128 = math.tanh %127 : vector<1x32xf32>
    %129 = arith.mulf %124, %128 : vector<1x32xf32>
    %130 = vector.extract_strided_slice %12 {offsets = [6, 0], sizes = [1, 128], strides = [1, 1]} : vector<8x128xf32> to vector<1x128xf32>
    %cst_24 = arith.constant dense<0.000000e+00> : vector<1x128xf32>
    %131 = tpu.matmul %129, %13, %cst_24 {dimension_numbers = #tpu.dot_dimension_numbers<[1], [0], [0], [1], [0, 0, 1, 1], [], []>} : vector<1x32xf32>, vector<32x128xf32>, vector<1x128xf32> -> vector<1x128xf32>
    %132 = arith.addf %130, %131 : vector<1x128xf32>
    %133 = vector.extract_strided_slice %132 {offsets = [0, 0], sizes = [1, 96], strides = [1, 1]} : vector<1x128xf32> to vector<1x96xf32>
    %134 = arith.negf %133 : vector<1x96xf32>
    %135 = math.exp %134 : vector<1x96xf32>
    %cst_25 = arith.constant 1.000000e+00 : f32
    %136 = vector.broadcast %cst_25 : f32 to vector<1x96xf32>
    %137 = arith.addf %136, %135 : vector<1x96xf32>
    %138 = arith.divf %136, %137 : vector<1x96xf32>
    %139 = vector.extract_strided_slice %132 {offsets = [0, 96], sizes = [1, 32], strides = [1, 1]} : vector<1x128xf32> to vector<1x32xf32>
    %140 = math.tanh %139 : vector<1x32xf32>
    %141 = vector.extract_strided_slice %138 {offsets = [0, 0], sizes = [1, 32], strides = [1, 1]} : vector<1x96xf32> to vector<1x32xf32>
    %142 = vector.extract_strided_slice %138 {offsets = [0, 32], sizes = [1, 32], strides = [1, 1]} : vector<1x96xf32> to vector<1x32xf32>
    %143 = vector.extract_strided_slice %138 {offsets = [0, 64], sizes = [1, 32], strides = [1, 1]} : vector<1x96xf32> to vector<1x32xf32>
    %144 = arith.mulf %142, %127 : vector<1x32xf32>
    %145 = arith.mulf %141, %140 : vector<1x32xf32>
    %146 = arith.addf %144, %145 : vector<1x32xf32>
    %147 = math.tanh %146 : vector<1x32xf32>
    %148 = arith.mulf %143, %147 : vector<1x32xf32>
    %149 = vector.extract_strided_slice %12 {offsets = [7, 0], sizes = [1, 128], strides = [1, 1]} : vector<8x128xf32> to vector<1x128xf32>
    %cst_26 = arith.constant dense<0.000000e+00> : vector<1x128xf32>
    %150 = tpu.matmul %148, %13, %cst_26 {dimension_numbers = #tpu.dot_dimension_numbers<[1], [0], [0], [1], [0, 0, 1, 1], [], []>} : vector<1x32xf32>, vector<32x128xf32>, vector<1x128xf32> -> vector<1x128xf32>
    %151 = arith.addf %149, %150 : vector<1x128xf32>
    %152 = vector.extract_strided_slice %151 {offsets = [0, 0], sizes = [1, 96], strides = [1, 1]} : vector<1x128xf32> to vector<1x96xf32>
    %153 = arith.negf %152 : vector<1x96xf32>
    %154 = math.exp %153 : vector<1x96xf32>
    %cst_27 = arith.constant 1.000000e+00 : f32
    %155 = vector.broadcast %cst_27 : f32 to vector<1x96xf32>
    %156 = arith.addf %155, %154 : vector<1x96xf32>
    %157 = arith.divf %155, %156 : vector<1x96xf32>
    %158 = vector.extract_strided_slice %151 {offsets = [0, 96], sizes = [1, 32], strides = [1, 1]} : vector<1x128xf32> to vector<1x32xf32>
    %159 = math.tanh %158 : vector<1x32xf32>
    %160 = vector.extract_strided_slice %157 {offsets = [0, 0], sizes = [1, 32], strides = [1, 1]} : vector<1x96xf32> to vector<1x32xf32>
    %161 = vector.extract_strided_slice %157 {offsets = [0, 32], sizes = [1, 32], strides = [1, 1]} : vector<1x96xf32> to vector<1x32xf32>
    %162 = vector.extract_strided_slice %157 {offsets = [0, 64], sizes = [1, 32], strides = [1, 1]} : vector<1x96xf32> to vector<1x32xf32>
    %163 = arith.mulf %161, %146 : vector<1x32xf32>
    %164 = arith.mulf %160, %159 : vector<1x32xf32>
    %165 = arith.addf %163, %164 : vector<1x32xf32>
    %166 = math.tanh %165 : vector<1x32xf32>
    %167 = arith.mulf %162, %166 : vector<1x32xf32>
    %168 = tpu.concatenate %34, %53, %72, %91, %110, %129, %148, %167 in 0 : vector<1x32xf32>, vector<1x32xf32>, vector<1x32xf32>, vector<1x32xf32>, vector<1x32xf32>, vector<1x32xf32>, vector<1x32xf32>, vector<1x32xf32> -> vector<8x32xf32>
    %c0_28 = arith.constant 0 : index
    %c0_29 = arith.constant 0 : index
    %169 = vector.load %arg5[%c0_28, %c0_29] : memref<32x128xf32, #tpu.memory_space<vmem>>, vector<32x128xf32>
    %cst_30 = arith.constant dense<0.000000e+00> : vector<8x128xf32>
    %170 = tpu.matmul %168, %169, %cst_30 {dimension_numbers = #tpu.dot_dimension_numbers<[1], [0], [0], [1], [0, 0, 1, 1], [], []>} : vector<8x32xf32>, vector<32x128xf32>, vector<8x128xf32> -> vector<8x128xf32>
    %c0_31 = arith.constant 0 : index
    %c0_32 = arith.constant 0 : index
    %171 = vector.load %arg6[%c0_31, %c0_32] : memref<1x128xf32, #tpu.memory_space<vmem>>, vector<1x128xf32>
    %172 = vector.broadcast %171 : vector<1x128xf32> to vector<8x128xf32>
    %173 = arith.addf %170, %172 : vector<8x128xf32>
    %174 = tpu.iota {dimensions = array<i32: 1>} : vector<8x128xi32>
    %c8_i32 = arith.constant 8 : i32
    %175 = vector.broadcast %c8_i32 : i32 to vector<8x128xi32>
    %176 = arith.cmpi slt, %174, %175 : vector<8x128xi32>
    %cst_33 = arith.constant -1.000000e+30 : f32
    %177 = vector.broadcast %cst_33 : f32 to vector<8x128xf32>
    %178 = arith.select %176, %173, %177 : vector<8x128xi1>, vector<8x128xf32>
    %cst_34 = arith.constant dense<0xFF800000> : vector<8xf32>
    %179 = vector.multi_reduction <maximumf>, %178, %cst_34 [1] : vector<8x128xf32> to vector<8xf32>
    %180 = vector.shape_cast %179 : vector<8xf32> to vector<8x1xf32>
    %181 = vector.broadcast %180 : vector<8x1xf32> to vector<8x128xf32>
    %182 = arith.subf %178, %181 : vector<8x128xf32>
    %183 = math.exp %182 : vector<8x128xf32>
    %cst_35 = arith.constant dense<0.000000e+00> : vector<8xf32>
    %184 = vector.multi_reduction <add>, %183, %cst_35 [1] : vector<8x128xf32> to vector<8xf32>
    %185 = vector.shape_cast %184 : vector<8xf32> to vector<8x1xf32>
    %186 = math.log %185 : vector<8x1xf32>
    %187 = vector.broadcast %186 : vector<8x1xf32> to vector<8x128xf32>
    %188 = arith.subf %182, %187 : vector<8x128xf32>
    %c0_36 = arith.constant 0 : index
    %c0_37 = arith.constant 0 : index
    %189 = vector.load %arg7[%c0_36, %c0_37] : memref<8x128xf32, #tpu.memory_space<vmem>>, vector<8x128xf32>
    tpu.vector_store %arg7[%c0_36, %c0_37], %188 {strides = array<i32>} : memref<8x128xf32, #tpu.memory_space<vmem>>, vector<8x128xf32>,
    return
  }
}

</mosaic_0001>

<bundles_post_ra>
// kernel: tpu_custom_call.1
= control target key start
LH: loop header
LB: loop body
LE: loop exit
PB: predicated region body
PF: predicated region fallthrough
CT: control target
= control target key end

     0   :  { %12 = vsyncpa [#allocation3], 0  ;;  %s1759_s0 = inlined_call_operand.vmem [shape: s32[8,1], index: 0, kind: input, shape index: {}]   ;;  %s1760_s1 = inlined_call_operand.vmem [shape: f32[20,16], index: 1, kind: input, shape index: {}]   ;;  %s1761_s2 = inlined_call_operand.vmem [shape: f32[16,128], index: 2, kind: input, shape index: {}]   ;;  %s1762_s3 = inlined_call_operand.vmem [shape: f32[32,128], index: 3, kind: input, shape index: {}]   ;;  %s1763_s4 = inlined_call_operand.vmem [shape: f32[1,128], index: 4, kind: input, shape index: {}]   ;;  %s1764_s5 = inlined_call_operand.hbm [shape: f32[32,128], index: 5, kind: input, shape index: {}]   ;;  %s1765_s6 = inlined_call_operand.vmem [shape: f32[1,128], index: 6, kind: input, shape index: {}]   ;;  %s1766_s7 = inlined_call_operand.hbm [shape: f32[8,128], index: 7, kind: output, shape index: {}]  }
   0x1   :  { %13 = vsyncpa [#allocation4], 0  ;;  %s1503_s24 = smov [#allocation2]  }
   0x2   :  { %s29_s25 = sshll.u32 %s1503_s24, 4  ;;  %s30_s25 = int_to_ptr.vmem [resolvable:$true] %s29_s25 }
   0x3   :  { %s1467_s26 = scalar_lea.vmem %s30_s25, 512  ;;  %p1472_p1 = scmp.lt.s32.totalorder %s30_s25, %s30_s25 }
   0x4   :  { %p1468_p0 = scmp.ne.s32.totalorder %s30_s25, %s1467_s26  ;;  %p1473_p2 = scmp.lt.s32.totalorder %s1467_s26, %s1467_s26 }
   0x6   :  { %p1474_p3 = por %p1473_p2, %p1472_p1 }
   0x8   :  { %p1475_p4 = pnand %p1474_p3, %p1468_p0 }
   0xa   :  { %1478 = shalt.err (!%p1475_p4)
}
   0xb   :  { %s1504_s27 = smov 128   ;;  %s1505_s28 = smov 8  }
   0xc   :  { %35 = dma.hbm_to_vmem [thread:$0]  %s1764_s5, 512, %s30_s25, [#allocation3], %s1504_s27, %s1504_s27, %s1505_s28  }
   0xd   :  { %1499 = dma.done.wait [#allocation3], 512  }
   0xe   :  { %1500 = vsyncadd [#allocation3], 4294966784  ;;  %v1506_v0 = vmov 0   ;;  %v1507_v1 = vmov 0.0   ;;  %vm57_vm0 = vcmask 1043456   ;;  %vm1508_vm1 = vmmov 0  }
   0xf   :  { %1390 = vset.pattern.permute.xlu0 %v1506_v0  ;;  %1266 = vmatprep.subr.mxu0 %v1507_v1  ;;  %v41_v2 = vld [vmem:[%s1759_s0] sm:$0xff]  ;;  %v52_v3 = vld [vmem:[%s1760_s1 + $0x10] sm:$0xf]  ;;  %v51_v4 = vld [vmem:[%s1760_s1 + $0x8] sm:$0xff]  ;;  %v42_v9 = vlaneseq  ;;  %vm53_vm2 = vcmask 162816   ;;  %vm140_vm4 = vcmask 130048  }
  0x10   :  { %1282 = vmatprep.subr.mxu1 %v1507_v1  ;;  %1272 = vmatprep.mubr.msk.f32.mxu0 %vm1508_vm1, %v1507_v1  ;;  %v1574_v5 = vld [vmem:[%s1762_s3 + $0x18] sm:$0xff]  ;;  %v1579_v6 = vld [vmem:[%s1762_s3 + $0x10] sm:$0xff]  ;;  %v50_v7 = vld [vmem:[%s1760_s1] sm:$0xff]  ;;  %s1509_s25 = smov 32   ;;  %vm218_vm5 = vcmask 261120   ;;  %vm1065_vm6 = vcmask 1040384  }
  0x11   :  { %1290 = vmatprep.mubr.msk.f32.mxu1 %vm1508_vm1, %v1507_v1  ;;  %45 = vperm.xlu0 %1390, %v41_v2   ;;  %v1590_v8 = vld [vmem:[%s1762_s3 + $0x8] sm:$0xff]  ;;  %v1598_v10 = vand.u32 127, %v42_v9  ;;  %v131_v14 = vld [vmem:[%s1761_s2] sm:$0xff]  ;;  %vm1067_vm7 = vcmask 1041408   ;;  %vm1069_vm8 = vcmask 1042432   ;;  %vm1072_vm9 = vcmask 1044480  }
  0x12   :  { %1267 = vmatpush3.msk.msra.mxu0 %vm57_vm0, %v52_v3  ;;  %1283 = vmatpush3.msra.mxu1 %v1574_v5  ;;  %v132_v12 = vld [vmem:[%s1761_s2 + $0x8] sm:$0xff]  ;;  %v1615_v15 = vld [vmem:[%s1762_s3] sm:$0xff]  ;;  %vm1074_vm10 = vcmask 1045504   ;;  %vm1076_vm11 = vcmask 1046528   ;;  %s1511_s28 = smov [#allocation5]  }
  0x13   :  { %1268 = vmatprep.subr.mxu0 %v1507_v1  ;;  %1284 = vmatprep.subr.mxu1 %v1507_v1  ;;  %v1195_v20 = vld [vmem:[%s1763_s4] ss:$0 sm:$0xff]  ;;  %s1510_s4 = smov 64   ;;  %vm1164_vm12 = vcmp.lt.s32.totalorder %v1598_v10, 8  ;;  %s1183_s29 = sshll.u32 %s1511_s28, 4  ;;  %s1184_s29 = int_to_ptr.vmem [resolvable:$true] %s1183_s29 }
  0x14   :  { %1269 = vmatpush3.msra.mxu0 %v51_v4  ;;  %1285 = vmatpush3.msra.mxu1 %v1579_v6  ;;  %p1484_p6 = scmp.lt.s32.totalorder %s1184_s29, %s1184_s29 }
  0x15   :  { %1270 = vmatprep.subr.mxu0 %v1507_v1  ;;  %1286 = vmatprep.subr.mxu1 %v1507_v1 }
  0x16   :  { %1271 = vmatpush3.msra.mxu0 %v50_v7  ;;  %1287 = vmatpush3.msra.mxu1 %v1590_v8 }
  0x17   :  { %1275 = vmatprep.subr.mxu0 %v1507_v1  ;;  %1288 = vmatprep.subr.mxu1 %v1507_v1 }
  0x18   :  { %1289 = vmatpush3.msra.mxu1 %v1615_v15 }
  0x19   :  { %1291 = vmatmul.mubr.f32.vlgmr.msra.gmra.mxu1 %v1507_v1  ;;  %1304 = vmatprep.subr.mxu1 %v1507_v1 }
  0x1a   :  { %1305 = vmatpush3.msra.mxu1 %v1574_v5  ;;  %1312 = vmatprep.mubr.msk.f32.mxu1 %vm1508_vm1, %v1507_v1 }
  0x1b   :  { %1306 = vmatprep.subr.mxu1 %v1507_v1 }
  0x1c   :  { %1307 = vmatpush3.msra.mxu1 %v1579_v6 }
  0x1d   :  { %1308 = vmatprep.subr.mxu1 %v1507_v1 }
  0x1e   :  { %1309 = vmatpush3.msra.mxu1 %v1590_v8 }
  0x1f   :  { %1310 = vmatprep.subr.mxu1 %v1507_v1 }
  0x20   :  { %1311 = vmatpush3.msra.mxu1 %v1615_v15 }
  0x21   :  { %1326 = vmatprep.subr.mxu1 %v1507_v1 }
  0x8c   :  { %v46_v11 = vpop.permute.xlu0 %45 }
  0x8d   :  { %vm47_vm3 = vcmp.eq.s32.totalorder %v1598_v10, %v46_v11 }
  0x8e   :  { %v1192_v13 = vsel %vm47_vm3, 1.0, %v1507_v1 }
  0x8f   :  { %1273 = vmatmul.mubr.msk.f32.vlgmr.msra.gmra.mxu0 %vm53_vm2, %v1192_v13 }
  0x90   :  { %1276 = vmatpush3.msra.mxu0 %v132_v12  ;;  %1279 = vmatprep.mubr.msk.f32.mxu0 %vm1508_vm1, %v1507_v1 }
  0x91   :  { %1277 = vmatprep.subr.mxu0 %v1507_v1 }
  0x92   :  { %1278 = vmatpush3.msra.mxu0 %v131_v14 }
  0x93   :  { %1293 = vmatprep.subr.mxu0 %v1507_v1 }
  0xd9   :  { %v288_v18 = vpop.f32.mrf.mxu1 }
  0xdb   :  { %v1292_v19 = vpop.f32.mrf.mxu1 }
 0x14f   :  { %v127_v16 = vpop.f32.mrf.mxu0 }
 0x150   :  { %1280 = vmatmul.mubr.msk.f32.vlgmr.msra.gmra.mxu0 %vm140_vm4, %v127_v16 }
 0x151   :  { %v1274_v17 = vpop.f32.mrf.mxu0  ;;  %1294 = vmatpush3.msra.mxu0 %v1574_v5  ;;  %1301 = vmatprep.mubr.msk.f32.mxu0 %vm1508_vm1, %v1507_v1 }
 0x152   :  { %1295 = vmatprep.subr.mxu0 %v1507_v1 }
 0x153   :  { %1296 = vmatpush3.msra.mxu0 %v1579_v6 }
 0x154   :  { %1297 = vmatprep.subr.mxu0 %v1507_v1 }
 0x155   :  { %1298 = vmatpush3.msra.mxu0 %v1590_v8 }
 0x156   :  { %1299 = vmatprep.subr.mxu0 %v1507_v1 }
 0x157   :  { %1300 = vmatpush3.msra.mxu0 %v1615_v15 }
 0x158   :  { %1315 = vmatprep.subr.mxu0 %v1507_v1 }
 0x210   :  { %v210_v21 = vpop.f32.mrf.mxu0 }
 0x211   :  { %v1643_v22 = vadd.f32 %v1195_v20, %v210_v21 }
 0x212   :  { %v1281_v23 = vpop.f32.mrf.mxu0 }
 0x213   :  { %v292_v24 = vadd.f32 %v288_v18, %v1643_v22 }
 0x215   :  { %1391 = vtanh.f32 %v292_v24  ;;  %v1197_v26 = vmul.f32 -1.442695, %v292_v24 }
 0x217   :  { %1393 = vpow2.f32 %v1197_v26 }
 0x222   :  { %v1392_v25 = vpop.eup %1391 }
 0x223   :  { %302 = vrot.lane.b32.xlu0 %v1392_v25, %s1509_s25 }
 0x224   :  { %v1394_v27 = vpop.eup %1393 }
 0x225   :  { %v296_v28 = vadd.f32 1.0, %v1394_v27 }
 0x227   :  { %1395 = vrcp.f32 %v296_v28 }
 0x234   :  { %v1396_v29 = vpop.eup %1395 }
 0x235   :  { %v300_v32 = vmul.f32 0.0, %v1396_v29 }
 0x295   :  { %v303_v30 = vpop.permute.xlu0 %302 }
 0x296   :  { %v305_v31 = vmul.f32 %v1396_v29, %v303_v30 }
 0x298   :  { %307 = vrot.lane.b32.xlu1 %v305_v31, %s1509_s25 }
 0x30a   :  { %v308_v33 = vpop.permute.xlu1 %307 }
 0x30b   :  { %v310_v34 = vadd.f32 %v308_v33, %v300_v32 }
 0x30d   :  { %1397 = vtanh.f32 %v310_v34  ;;  %v404_v50 = vrot.slane %v310_v34, 7 }
 0x31a   :  { %v1398_v35 = vpop.eup %1397 }
 0x31b   :  { %313 = vrot.lane.b32.xlu1 %v1398_v35, %s1509_s25 }
 0x38d   :  { %v314_v36 = vpop.permute.xlu1 %313 }
 0x38e   :  { %v1649_v37 = vmul.f32 %v1396_v29, %v314_v36 }
 0x390   :  { %318 = vrot.lane.b32.xlu0 %v1649_v37, %s1510_s4 }
 0x402   :  { %v319_v38 = vpop.permute.xlu0 %318 }
 0x403   :  { %1302 = vmatmul.mubr.msk.f32.vlgmr.msra.gmra.mxu0 %vm218_vm5, %v319_v38 }
 0x404   :  { %1316 = vmatpush3.msra.mxu0 %v1574_v5  ;;  %1323 = vmatprep.mubr.msk.f32.mxu0 %vm1508_vm1, %v1507_v1 }
 0x405   :  { %1317 = vmatprep.subr.mxu0 %v1507_v1 }
 0x406   :  { %1318 = vmatpush3.msra.mxu0 %v1579_v6 }
 0x407   :  { %1319 = vmatprep.subr.mxu0 %v1507_v1 }
 0x408   :  { %1320 = vmatpush3.msra.mxu0 %v1590_v8 }
 0x409   :  { %1321 = vmatprep.subr.mxu0 %v1507_v1 }
 0x40a   :  { %1322 = vmatpush3.msra.mxu0 %v1615_v15 }
 0x40b   :  { %1337 = vmatprep.subr.mxu0 %v1507_v1 }
 0x4c3   :  { %v388_v39 = vpop.f32.mrf.mxu0 }
 0x4c4   :  { %v393_v40 = vrot.slane %v388_v39, 7 }
 0x4c5   :  { %v1303_v41 = vpop.f32.mrf.mxu0 }
 0x4c6   :  { %v395_v42 = vadd.f32 %v393_v40, %v1643_v22 }
 0x4c8   :  { %1399 = vtanh.f32 %v395_v42  ;;  %v1199_v44 = vmul.f32 -1.442695, %v395_v42 }
 0x4ca   :  { %1401 = vpow2.f32 %v1199_v44 }
 0x4d5   :  { %v1400_v43 = vpop.eup %1399 }
 0x4d6   :  { %408 = vrot.lane.b32.xlu1 %v1400_v43, %s1509_s25 }
 0x4d7   :  { %v1402_v45 = vpop.eup %1401 }
 0x4d8   :  { %v399_v46 = vadd.f32 1.0, %v1402_v45 }
 0x4da   :  { %1403 = vrcp.f32 %v399_v46 }
 0x4e7   :  { %v1404_v47 = vpop.eup %1403 }
 0x4e8   :  { %v406_v51 = vmul.f32 %v1404_v47, %v404_v50 }
 0x548   :  { %v409_v48 = vpop.permute.xlu1 %408 }
 0x549   :  { %v411_v49 = vmul.f32 %v1404_v47, %v409_v48 }
 0x54b   :  { %413 = vrot.lane.b32.xlu0 %v411_v49, %s1509_s25 }
 0x5bd   :  { %v414_v52 = vpop.permute.xlu0 %413 }
 0x5be   :  { %v416_v53 = vadd.f32 %v414_v52, %v406_v51 }
 0x5c0   :  { %1405 = vtanh.f32 %v416_v53  ;;  %v511_v11 = vrot.slane %v416_v53, 7 }
 0x5cd   :  { %v1406_v54 = vpop.eup %1405 }
 0x5ce   :  { %419 = vrot.lane.b32.xlu1 %v1406_v54, %s1509_s25 }
 0x640   :  { %v420_v55 = vpop.permute.xlu1 %419 }
 0x641   :  { %v422_v56 = vmul.f32 %v1404_v47, %v420_v55 }
 0x643   :  { %v424_v57 = vrot.slane %v422_v56, 1  ;;  %v1066_v19 = vsel %vm1065_vm6, %v1649_v37, %v422_v56 }
 0x645   :  { %425 = vrot.lane.b32.xlu0 %v424_v57, %s1510_s4 }
 0x6b7   :  { %v426_v58 = vpop.permute.xlu0 %425 }
 0x6b8   :  { %1313 = vmatmul.mubr.msk.f32.vlgmr.msra.gmra.mxu1 %vm218_vm5, %v426_v58 }
 0x6b9   :  { %1327 = vmatpush3.msra.mxu1 %v1574_v5  ;;  %1334 = vmatprep.mubr.msk.f32.mxu1 %vm1508_vm1, %v1507_v1 }
 0x6ba   :  { %1328 = vmatprep.subr.mxu1 %v1507_v1 }
 0x6bb   :  { %1329 = vmatpush3.msra.mxu1 %v1579_v6 }
 0x6bc   :  { %1330 = vmatprep.subr.mxu1 %v1507_v1 }
 0x6bd   :  { %1331 = vmatpush3.msra.mxu1 %v1590_v8 }
 0x6be   :  { %1332 = vmatprep.subr.mxu1 %v1507_v1 }
 0x6bf   :  { %1333 = vmatpush3.msra.mxu1 %v1615_v15 }
 0x6c0   :  { %1348 = vmatprep.subr.mxu1 %v1507_v1 }
 0x778   :  { %v495_v59 = vpop.f32.mrf.mxu1 }
 0x779   :  { %v500_v60 = vrot.slane %v495_v59, 6 }
 0x77a   :  { %v1314_v61 = vpop.f32.mrf.mxu1 }
 0x77b   :  { %v502_v62 = vadd.f32 %v500_v60, %v1643_v22 }
 0x77d   :  { %1407 = vtanh.f32 %v502_v62  ;;  %v1201_v0 = vmul.f32 -1.442695, %v502_v62 }
 0x77f   :  { %1409 = vpow2.f32 %v1201_v0 }
 0x78a   :  { %v1408_v63 = vpop.eup %1407 }
 0x78b   :  { %515 = vrot.lane.b32.xlu1 %v1408_v63, %s1509_s25 }
 0x78c   :  { %v1410_v2 = vpop.eup %1409 }
 0x78d   :  { %v506_v3 = vadd.f32 1.0, %v1410_v2 }
 0x78f   :  { %1411 = vrcp.f32 %v506_v3 }
 0x79c   :  { %v1412_v4 = vpop.eup %1411 }
 0x79d   :  { %v513_v12 = vmul.f32 %v1412_v4, %v511_v11 }
 0x7fd   :  { %v516_v7 = vpop.permute.xlu1 %515 }
 0x7fe   :  { %v518_v9 = vmul.f32 %v1412_v4, %v516_v7 }
 0x800   :  { %520 = vrot.lane.b32.xlu0 %v518_v9, %s1509_s25 }
 0x872   :  { %v521_v13 = vpop.permute.xlu0 %520 }
 0x873   :  { %v523_v14 = vadd.f32 %v521_v13, %v513_v12 }
 0x875   :  { %1413 = vtanh.f32 %v523_v14  ;;  %v618_v35 = vrot.slane %v523_v14, 7 }
 0x882   :  { %v1414_v16 = vpop.eup %1413 }
 0x883   :  { %526 = vrot.lane.b32.xlu1 %v1414_v16, %s1509_s25 }
 0x8f5   :  { %v527_v17 = vpop.permute.xlu1 %526 }
 0x8f6   :  { %v529_v18 = vmul.f32 %v1412_v4, %v527_v17 }
 0x8f8   :  { %v531_v20 = vrot.slane %v529_v18, 2  ;;  %v1068_v21 = vsel %vm1067_vm7, %v1066_v19, %v529_v18 }
 0x8fa   :  { %532 = vrot.lane.b32.xlu0 %v531_v20, %s1510_s4 }
 0x96c   :  { %v533_v23 = vpop.permute.xlu0 %532 }
 0x96d   :  { %1324 = vmatmul.mubr.msk.f32.vlgmr.msra.gmra.mxu0 %vm218_vm5, %v533_v23 }
 0x96e   :  { %1338 = vmatpush3.msra.mxu0 %v1574_v5  ;;  %1345 = vmatprep.mubr.msk.f32.mxu0 %vm1508_vm1, %v1507_v1 }
 0x96f   :  { %1339 = vmatprep.subr.mxu0 %v1507_v1 }
 0x970   :  { %1340 = vmatpush3.msra.mxu0 %v1579_v6 }
 0x971   :  { %1341 = vmatprep.subr.mxu0 %v1507_v1 }
 0x972   :  { %1342 = vmatpush3.msra.mxu0 %v1590_v8 }
 0x973   :  { %1343 = vmatprep.subr.mxu0 %v1507_v1 }
 0x974   :  { %1344 = vmatpush3.msra.mxu0 %v1615_v15 }
 0x975   :  { %1359 = vmatprep.subr.mxu0 %v1507_v1 }
 0xa2d   :  { %v602_v24 = vpop.f32.mrf.mxu0 }
 0xa2e   :  { %v607_v25 = vrot.slane %v602_v24, 5 }
 0xa2f   :  { %v1325_v26 = vpop.f32.mrf.mxu0 }
 0xa30   :  { %v609_v27 = vadd.f32 %v607_v25, %v1643_v22 }
 0xa32   :  { %1415 = vtanh.f32 %v609_v27  ;;  %v1203_v29 = vmul.f32 -1.442695, %v609_v27 }
 0xa34   :  { %1417 = vpow2.f32 %v1203_v29 }
 0xa3f   :  { %v1416_v28 = vpop.eup %1415 }
 0xa40   :  { %622 = vrot.lane.b32.xlu1 %v1416_v28, %s1509_s25 }
 0xa41   :  { %v1418_v30 = vpop.eup %1417 }
 0xa42   :  { %v613_v31 = vadd.f32 1.0, %v1418_v30 }
 0xa44   :  { %1419 = vrcp.f32 %v613_v31 }
 0xa51   :  { %v1420_v32 = vpop.eup %1419 }
 0xa52   :  { %v620_v36 = vmul.f32 %v1420_v32, %v618_v35 }
 0xab2   :  { %v623_v33 = vpop.permute.xlu1 %622 }
 0xab3   :  { %v625_v34 = vmul.f32 %v1420_v32, %v623_v33 }
 0xab5   :  { %627 = vrot.lane.b32.xlu0 %v625_v34, %s1509_s25 }
 0xb27   :  { %v628_v37 = vpop.permute.xlu0 %627 }
 0xb28   :  { %v630_v38 = vadd.f32 %v628_v37, %v620_v36 }
 0xb2a   :  { %1421 = vtanh.f32 %v630_v38  ;;  %v725_v56 = vrot.slane %v630_v38, 7 }
 0xb37   :  { %v1422_v39 = vpop.eup %1421 }
 0xb38   :  { %633 = vrot.lane.b32.xlu1 %v1422_v39, %s1509_s25 }
 0xbaa   :  { %v634_v40 = vpop.permute.xlu1 %633 }
 0xbab   :  { %v636_v41 = vmul.f32 %v1420_v32, %v634_v40 }
 0xbad   :  { %v638_v42 = vrot.slane %v636_v41, 3  ;;  %v1070_v43 = vsel %vm1069_vm8, %v1068_v21, %v636_v41 }
 0xbaf   :  { %639 = vrot.lane.b32.xlu0 %v638_v42, %s1510_s4 }
 0xc21   :  { %v640_v44 = vpop.permute.xlu0 %639 }
 0xc22   :  { %1335 = vmatmul.mubr.msk.f32.vlgmr.msra.gmra.mxu1 %vm218_vm5, %v640_v44 }
 0xc23   :  { %1349 = vmatpush3.msra.mxu1 %v1574_v5  ;;  %1356 = vmatprep.mubr.msk.f32.mxu1 %vm1508_vm1, %v1507_v1 }
 0xc24   :  { %1350 = vmatprep.subr.mxu1 %v1507_v1 }
 0xc25   :  { %1351 = vmatpush3.msra.mxu1 %v1579_v6 }
 0xc26   :  { %1352 = vmatprep.subr.mxu1 %v1507_v1 }
 0xc27   :  { %1353 = vmatpush3.msra.mxu1 %v1590_v8 }
 0xc28   :  { %1354 = vmatprep.subr.mxu1 %v1507_v1 }
 0xc29   :  { %1355 = vmatpush3.msra.mxu1 %v1615_v15 }
 0xc2a   :  { %1370 = vmatprep.subr.mxu1 %v1507_v1 }
 0xce2   :  { %v709_v45 = vpop.f32.mrf.mxu1 }
 0xce3   :  { %v714_v46 = vrot.slane %v709_v45, 4 }
 0xce4   :  { %v1336_v47 = vpop.f32.mrf.mxu1 }
 0xce5   :  { %v716_v48 = vadd.f32 %v714_v46, %v1643_v22 }
 0xce7   :  { %1423 = vtanh.f32 %v716_v48  ;;  %v1205_v50 = vmul.f32 -1.442695, %v716_v48 }
 0xce9   :  { %1425 = vpow2.f32 %v1205_v50 }
 0xcf4   :  { %v1424_v49 = vpop.eup %1423 }
 0xcf5   :  { %729 = vrot.lane.b32.xlu1 %v1424_v49, %s1509_s25 }
 0xcf6   :  { %v1426_v51 = vpop.eup %1425 }
 0xcf7   :  { %v720_v52 = vadd.f32 1.0, %v1426_v51 }
 0xcf9   :  { %1427 = vrcp.f32 %v720_v52 }
 0xd06   :  { %v1428_v53 = vpop.eup %1427 }
 0xd07   :  { %v727_v57 = vmul.f32 %v1428_v53, %v725_v56 }
 0xd67   :  { %v730_v54 = vpop.permute.xlu1 %729 }
 0xd68   :  { %v732_v55 = vmul.f32 %v1428_v53, %v730_v54 }
 0xd6a   :  { %734 = vrot.lane.b32.xlu0 %v732_v55, %s1509_s25 }
 0xddc   :  { %v735_v58 = vpop.permute.xlu0 %734 }
 0xddd   :  { %v737_v59 = vadd.f32 %v735_v58, %v727_v57 }
 0xddf   :  { %1429 = vtanh.f32 %v737_v59 }
 0xdec   :  { %v1430_v60 = vpop.eup %1429 }
 0xded   :  { %740 = vrot.lane.b32.xlu1 %v1430_v60, %s1509_s25 }
 0xe5f   :  { %v741_v61 = vpop.permute.xlu1 %740 }
 0xe60   :  { %v743_v62 = vmul.f32 %v1428_v53, %v741_v61 }
 0xe62   :  { %v745_v63 = vrot.slane %v743_v62, 4  ;;  %v1071_v0 = vsel %vm57_vm0, %v1070_v43, %v743_v62  ;;  %v1080_v62 = vld [vmem:[#allocation2 + $0x10] sm:$0xff] }
 0xe64   :  { %746 = vrot.lane.b32.xlu0 %v745_v63, %s1510_s4  ;;  %v1079_v63 = vld [vmem:[#allocation2 + $0x8] sm:$0xff] }
 0xed6   :  { %v747_v2 = vpop.permute.xlu0 %746 }
 0xed7   :  { %1346 = vmatmul.mubr.msk.f32.vlgmr.msra.gmra.mxu0 %vm218_vm5, %v747_v2 }
 0xed8   :  { %1360 = vmatpush3.msra.mxu0 %v1574_v5  ;;  %1367 = vmatprep.mubr.msk.f32.mxu0 %vm1508_vm1, %v1507_v1 }
 0xed9   :  { %1361 = vmatprep.subr.mxu0 %v1507_v1 }
 0xeda   :  { %1362 = vmatpush3.msra.mxu0 %v1579_v6 }
 0xedb   :  { %1363 = vmatprep.subr.mxu0 %v1507_v1 }
 0xedc   :  { %1364 = vmatpush3.msra.mxu0 %v1590_v8 }
 0xedd   :  { %1365 = vmatprep.subr.mxu0 %v1507_v1 }
 0xede   :  { %1366 = vmatpush3.msra.mxu0 %v1615_v15  ;;  %v832_v15 = vrot.slane %v737_v59, 7 }
 0xf97   :  { %v816_v3 = vpop.f32.mrf.mxu0 }
 0xf98   :  { %v821_v4 = vrot.slane %v816_v3, 3 }
 0xf99   :  { %v1347_v7 = vpop.f32.mrf.mxu0 }
 0xf9a   :  { %v823_v5 = vadd.f32 %v821_v4, %v1643_v22 }
 0xf9c   :  { %1431 = vtanh.f32 %v823_v5  ;;  %v1207_v11 = vmul.f32 -1.442695, %v823_v5 }
 0xf9e   :  { %1433 = vpow2.f32 %v1207_v11 }
 0xfa9   :  { %v1432_v9 = vpop.eup %1431 }
 0xfaa   :  { %836 = vrot.lane.b32.xlu1 %v1432_v9, %s1509_s25  ;;  %v1212_v9 = vld [vmem:[%s1765_s6] ss:$0 sm:$0xff]  ;;  %s1479_s6 = scalar_lea.vmem %s1184_s29, 128 }
 0xfab   :  { %v1434_v6 = vpop.eup %1433  ;;  %p1480_p5 = scmp.ne.s32.totalorder %s1184_s29, %s1479_s6  ;;  %p1485_p7 = scmp.lt.s32.totalorder %s1479_s6, %s1479_s6 }
 0xfac   :  { %v827_v12 = vadd.f32 1.0, %v1434_v6 }
 0xfad   :  { %p1486_p8 = por %p1485_p7, %p1484_p6 }
 0xfae   :  { %1435 = vrcp.f32 %v827_v12 }
 0xfaf   :  { %p1487_p9 = pnand %p1486_p8, %p1480_p5 }
 0xfbb   :  { %v1436_v13 = vpop.eup %1435 }
 0xfbc   :  { %v834_v16 = vmul.f32 %v1436_v13, %v832_v15 }
0x101c   :  { %v837_v8 = vpop.permute.xlu1 %836 }
0x101d   :  { %v839_v14 = vmul.f32 %v1436_v13, %v837_v8 }
0x101f   :  { %841 = vrot.lane.b32.xlu0 %v839_v14, %s1509_s25 }
0x1091   :  { %v842_v17 = vpop.permute.xlu0 %841 }
0x1092   :  { %v844_v18 = vadd.f32 %v842_v17, %v834_v16 }
0x1094   :  { %1437 = vtanh.f32 %v844_v18  ;;  %v939_v37 = vrot.slane %v844_v18, 7 }
0x10a1   :  { %v1438_v19 = vpop.eup %1437 }
0x10a2   :  { %847 = vrot.lane.b32.xlu1 %v1438_v19, %s1509_s25 }
0x1114   :  { %v848_v20 = vpop.permute.xlu1 %847 }
0x1115   :  { %v850_v21 = vmul.f32 %v1436_v13, %v848_v20 }
0x1117   :  { %v852_v23 = vrot.slane %v850_v21, 5  ;;  %v1073_v24 = vsel %vm1072_vm9, %v1071_v0, %v850_v21  ;;  %v1078_v0 = vld [vmem:[#allocation2] sm:$0xff] }
0x1119   :  { %853 = vrot.lane.b32.xlu0 %v852_v23, %s1510_s4 }
0x118b   :  { %v854_v25 = vpop.permute.xlu0 %853 }
0x118c   :  { %1357 = vmatmul.mubr.msk.f32.vlgmr.msra.gmra.mxu1 %vm218_vm5, %v854_v25 }
0x118d   :  { %1378 = vmatprep.mubr.msk.f32.mxu1 %vm1508_vm1, %v1507_v1 }
0x124c   :  { %v923_v26 = vpop.f32.mrf.mxu1 }
0x124d   :  { %v928_v27 = vrot.slane %v923_v26, 2 }
0x124e   :  { %v1358_v28 = vpop.f32.mrf.mxu1 }
0x124f   :  { %v930_v29 = vadd.f32 %v928_v27, %v1643_v22 }
0x1251   :  { %1439 = vtanh.f32 %v930_v29  ;;  %v1209_v31 = vmul.f32 -1.442695, %v930_v29 }
0x1253   :  { %1441 = vpow2.f32 %v1209_v31 }
0x125e   :  { %v1440_v30 = vpop.eup %1439 }
0x125f   :  { %943 = vrot.lane.b32.xlu1 %v1440_v30, %s1509_s25 }
0x1260   :  { %v1442_v32 = vpop.eup %1441 }
0x1261   :  { %v934_v33 = vadd.f32 1.0, %v1442_v32 }
0x1263   :  { %1443 = vrcp.f32 %v934_v33 }
0x1270   :  { %v1444_v34 = vpop.eup %1443 }
0x1271   :  { %v941_v38 = vmul.f32 %v1444_v34, %v939_v37 }
0x12d1   :  { %v944_v35 = vpop.permute.xlu1 %943 }
0x12d2   :  { %v946_v36 = vmul.f32 %v1444_v34, %v944_v35 }
0x12d4   :  { %948 = vrot.lane.b32.xlu0 %v946_v36, %s1509_s25 }
0x1346   :  { %v949_v39 = vpop.permute.xlu0 %948 }
0x1347   :  { %v951_v40 = vadd.f32 %v949_v39, %v941_v38 }
0x1349   :  { %1445 = vtanh.f32 %v951_v40  ;;  %v1046_v58 = vrot.slane %v951_v40, 7 }
0x1356   :  { %v1446_v41 = vpop.eup %1445 }
0x1357   :  { %954 = vrot.lane.b32.xlu1 %v1446_v41, %s1509_s25 }
0x13c9   :  { %v955_v42 = vpop.permute.xlu1 %954 }
0x13ca   :  { %v957_v43 = vmul.f32 %v1444_v34, %v955_v42 }
0x13cc   :  { %v959_v44 = vrot.slane %v957_v43, 6  ;;  %v1075_v45 = vsel %vm1074_vm10, %v1073_v24, %v957_v43 }
0x13ce   :  { %960 = vrot.lane.b32.xlu0 %v959_v44, %s1510_s4 }
0x1440   :  { %v961_v46 = vpop.permute.xlu0 %960 }
0x1441   :  { %1368 = vmatmul.mubr.msk.f32.vlgmr.msra.gmra.mxu0 %vm218_vm5, %v961_v46 }
0x1501   :  { %v1030_v47 = vpop.f32.mrf.mxu0 }
0x1502   :  { %v1035_v48 = vrot.slane %v1030_v47, 1 }
0x1503   :  { %v1369_v49 = vpop.f32.mrf.mxu0 }
0x1504   :  { %v1037_v50 = vadd.f32 %v1035_v48, %v1643_v22  ;;  %v1081_v22 = vld [vmem:[#allocation2 + $0x18] sm:$0xff] }
0x1505   :  { %1371 = vmatpush3.msra.mxu1 %v1081_v22 }
0x1506   :  { %1447 = vtanh.f32 %v1037_v50  ;;  %v1211_v52 = vmul.f32 -1.442695, %v1037_v50  ;;  %1372 = vmatprep.subr.mxu1 %v1507_v1 }
0x1507   :  { %1373 = vmatpush3.msra.mxu1 %v1080_v62 }
0x1508   :  { %1449 = vpow2.f32 %v1211_v52  ;;  %1374 = vmatprep.subr.mxu1 %v1507_v1 }
0x1509   :  { %1375 = vmatpush3.msra.mxu1 %v1079_v63 }
0x150a   :  { %1376 = vmatprep.subr.mxu1 %v1507_v1 }
0x150b   :  { %1377 = vmatpush3.msra.mxu1 %v1078_v0 }
0x1513   :  { %v1448_v51 = vpop.eup %1447 }
0x1514   :  { %1050 = vrot.lane.b32.xlu1 %v1448_v51, %s1509_s25 }
0x1515   :  { %v1450_v53 = vpop.eup %1449 }
0x1516   :  { %v1041_v54 = vadd.f32 1.0, %v1450_v53 }
0x1518   :  { %1451 = vrcp.f32 %v1041_v54 }
0x1525   :  { %v1452_v55 = vpop.eup %1451 }
0x1526   :  { %v1048_v59 = vmul.f32 %v1452_v55, %v1046_v58 }
0x1586   :  { %v1051_v56 = vpop.permute.xlu1 %1050 }
0x1587   :  { %v1053_v57 = vmul.f32 %v1452_v55, %v1051_v56 }
0x1589   :  { %1055 = vrot.lane.b32.xlu0 %v1053_v57, %s1509_s25 }
0x15fb   :  { %v1056_v60 = vpop.permute.xlu0 %1055 }
0x15fc   :  { %v1058_v61 = vadd.f32 %v1056_v60, %v1048_v59 }
0x15fe   :  { %1453 = vtanh.f32 %v1058_v61 }
0x160b   :  { %v1454_v2 = vpop.eup %1453 }
0x160c   :  { %1061 = vrot.lane.b32.xlu1 %v1454_v2, %s1509_s25 }
0x167e   :  { %v1062_v3 = vpop.permute.xlu1 %1061 }
0x167f   :  { %v1064_v4 = vmul.f32 %v1452_v55, %v1062_v3 }
0x1681   :  { %v1077_v7 = vsel %vm1076_vm11, %v1075_v45, %v1064_v4 }
0x1682   :  { %1090 = vrot.lane.b32.xlu0 %v1077_v7, %s1510_s4 }
0x16f4   :  { %v1091_v5 = vpop.permute.xlu0 %1090 }
0x16f5   :  { %1379 = vmatmul.mubr.msk.f32.vlgmr.msra.gmra.mxu1 %vm218_vm5, %v1091_v5 }
0x17b5   :  { %v1160_v11 = vpop.f32.mrf.mxu1 }
0x17b6   :  { %v1161_v1 = vadd.f32 %v1212_v9, %v1160_v11 }
0x17b7   :  { %v1380_v6 = vpop.f32.mrf.mxu1 }
0x17b8   :  { %v1165_v12 = vsel %vm1164_vm12, %v1161_v1, -1e+30 }
0x17b9   :  { %1166 = vmax.xlane.f32.xlu1 %v1165_v12 }
0x1842   :  { %v1167_v13 = vpop.xlane.xlu1 %1166 }
0x1843   :  { %v1168_v8 = vsub.f32 %v1165_v12, %v1167_v13 }
0x1845   :  { %v1169_v14 = vmul.f32 1.442695, %v1168_v8 }
0x1847   :  { %1455 = vpow2.f32 %v1169_v14 }
0x1854   :  { %v1456_v15 = vpop.eup %1455 }
0x1855   :  { %1171 = vadd.xlane.f32.xlu0 %v1456_v15 }
0x18de   :  { %v1172_v16 = vpop.xlane.xlu0 %1171 }
0x18df   :  { %1457 = vlog2.f32 %v1172_v16 }
0x18ec   :  { %v1458_v17 = vpop.eup %1457 }
0x18ed   :  { %v1174_v18 = vmul.f32 0.6931472, %v1458_v17 }
0x18ef   :  { %v1175_v19 = vsub.f32 %v1168_v8, %v1174_v18 }
0x18f1   :  { %1176 = vst [vmem:[#allocation5] sm:$0xff] %v1175_v19 }
0x18f2   :  { %1490 = shalt.err (!%p1487_p9)
}
0x18f3   :  { %1186 = dma.vmem_to_hbm [thread:$0]  %s1184_s29, 128, %s1766_s7, [#allocation4]  }
0x18f4   :  { %1501 = dma.done.wait [#allocation4], 128  }
0x18f5   :  { %1502 = vsyncadd [#allocation4], 4294967168 }
0x18f6   :  { %1190 = vsyncpa [#allocation3], 1 }
0x18f7   :  { %1191 = vsyncpa [#allocation4], 1 }

</bundles_post_ra>
